<compile_context>
chip_gen: v7x
topology: tpu7x:2x2x1
jax: 0.10.0
libtpu: 0.0.40
codegen_flags: <defaults>
</compile_context>

<pallas_src>
import functools

import jax
import jax.numpy as jnp
from jax import lax
from jax.experimental import pallas as pl
from jax.experimental.pallas import tpu as pltpu

EPS = 1e-5
VMEM_LIMIT = 32 * 1024 * 1024  # safe on v5e/v6e (128 MiB) and v7x (64 MiB physical)


# ----------------------------- Pallas kernels ------------------------------ #

def _stats_kernel(x_ref, sum_ref, sq_ref):
    """Per-column sum / sum-of-squares, accumulated across the (arbitrary) grid."""
    @pl.when(pl.program_id(0) == 0)
    def _init():
        sum_ref[...] = jnp.zeros_like(sum_ref)
        sq_ref[...] = jnp.zeros_like(sq_ref)

    x = x_ref[...].astype(jnp.float32)
    sum_ref[...] += jnp.sum(x, axis=0, keepdims=True)
    sq_ref[...] += jnp.sum(x * x, axis=0, keepdims=True)


def _make_fused_kernel(NB, H, W, C, Cout, conv_dtype, *, with_residual, with_stats):
    """Fused BN(scale/shift)+ReLU+3x3conv(+residual)(+next-BN stats), NB images/step."""
    WC, WCo = W * C, W * Cout
    M = NB * H

    def kernel(*refs):
        it = iter(refs)
        x_ref = next(it)
        scale_ref = next(it)
        shift_ref = next(it)
        w_ref = next(it)
        res_ref = next(it) if with_residual else None
        o_ref = next(it)
        sum_ref = next(it) if with_stats else None
        sq_ref = next(it) if with_stats else None

        # Pre-activation BN (precomputed per-channel scale/shift) + ReLU, f32 VPU math.
        x = x_ref[...].reshape(M, WC).astype(jnp.float32)
        y = jnp.maximum(x * scale_ref[...] + shift_ref[...], 0.0)          # (M, WC)

        # Row-shifted taps via XLU rolls.  Rows whose shift crossed an image
        # boundary (or wrapped around the stack) are zeroed -> 'same' H padding.
        row = lax.broadcasted_iota(jnp.int32, (M, WC), 0)
        h_in = row % H
        up = jnp.where(h_in == 0, 0.0, pltpu.roll(y, 1, axis=0))           # x[h-1]
        dn = jnp.where(h_in == H - 1, 0.0, pltpu.roll(y, M - 1, axis=0))   # x[h+1]

        # One K = 3*W*C matmul against the flattened block-tridiagonal weights.
        lhs = jnp.concatenate([up, y, dn], axis=1).astype(conv_dtype)      # (M, 3*WC)
        acc = jnp.dot(lhs, w_ref[...], preferred_element_type=jnp.float32)  # (M, WCo)

        if with_stats:
            # Statistics of this conv's output (f32, pre-cast; no residual on conv1).
            sum_ref[...] = jnp.sum(acc, axis=0, keepdims=True).reshape(1, 1, WCo)
            sq_ref[...] = jnp.sum(acc * acc, axis=0, keepdims=True).reshape(1, 1, WCo)

        if with_residual:
            acc = acc + res_ref[...].reshape(M, WCo).astype(jnp.float32)   # exact f32

        o_ref[...] = acc.reshape(NB, H, WCo).astype(o_ref.dtype)

    return kernel


# ----------------------------- Pallas wrappers ----------------------------- #

def _row_tile(n_rows):
    for t in (1024, 512, 256, 128, 64, 32, 16, 8):
        if n_rows % t == 0:
            return t
    return n_rows


def _channel_stats(x_rows):
    """x_rows: (MR, W*C) -> (sum, sumsq), each (1, W*C), reduced over all rows."""
    MR, WC = x_rows.shape
    TM = _row_tile(MR)
    return pl.pallas_call(
        _stats_kernel,
        out_shape=(jax.ShapeDtypeStruct((1, WC), jnp.float32),
                   jax.ShapeDtypeStruct((1, WC), jnp.float32)),
        grid=(MR // TM,),
        in_specs=[pl.BlockSpec((TM, WC), lambda i: (i, 0))],
        out_specs=(pl.BlockSpec((1, WC), lambda i: (0, 0)),
                   pl.BlockSpec((1, WC), lambda i: (0, 0))),
        compiler_params=pltpu.CompilerParams(
            dimension_semantics=("arbitrary",),
            vmem_limit_bytes=VMEM_LIMIT),
    )(x_rows)


def _finalize_bn(sum_wc, sq_wc, gamma, beta, count, W):
    """Per-column sums (any leading dims, last dim W*C) -> BN scale/shift (1, W*C)."""
    C = gamma.shape[0]
    sum_c = jnp.asarray(sum_wc, jnp.float32).reshape(-1, W, C).sum(axis=(0, 1))
    sq_c = jnp.asarray(sq_wc, jnp.float32).reshape(-1, W, C).sum(axis=(0, 1))
    mean = sum_c / count
    # TODO(synk): E[x^2]-E[x]^2 can cancel catastrophically for large-mean data at
    #             production scales; switch to a shifted / Welford accumulation.
    var = jnp.maximum(sq_c / count - mean * mean, 0.0)
    inv = lax.rsqrt(var + EPS)
    scale = gamma * inv
    shift = beta - mean * scale
    return (jnp.tile(scale, W).reshape(1, W * C).astype(jnp.float32),
            jnp.tile(shift, W).reshape(1, W * C).astype(jnp.float32))


def _toeplitz_weights(w_hwio, W):
    """(3, 3, C, Cout) -> (3*W*C, W*Cout) flattened block-tridiagonal row-conv matrix.

    G[di][v*C+ci, w*Cout+co] = w_hwio[di, v-w+1, ci, co] for |v-w| <= 1, else 0.
    The W-direction 'same' zero padding is folded in; taps are flattened along K.
    """
    kh, kw, C, Cout = w_hwio.shape
    G = jnp.zeros((kh, W * C, W * Cout), w_hwio.dtype)
    for w in range(W):
        for dj in range(kw):
            v = w + dj - 1
            if 0 <= v < W:
                G = G.at[:, v * C:(v + 1) * C, w * Cout:(w + 1) * Cout].set(w_hwio[:, dj])
    return G.reshape(kh * W * C, W * Cout)


def _images_per_step(N, H):
    """Largest NB dividing N with M = NB*H <= ~256 (fill the 256-row v6e/v7x MXU)."""
    # TODO(synk): at large N also cap NB so the grid keeps >=2 steps per core
    #             (v7x megacore) for DMA/compute overlap.
    target = max(1, 256 // H)
    nb = 1
    for cand in range(1, min(N, target) + 1):
        if N % cand == 0:
            nb = cand
    return nb


def _fused_bn_relu_conv(x2, scale_t, shift_t, g_flat, *, C, Cout, conv_dtype,
                        residual=None, out_dtype=None, emit_stats=False):
    """Fused BN+ReLU+3x3conv(+residual)(+output stats).  x2: (N, H, W*C)."""
    N, H, WC = x2.shape
    W = WC // C
    WCo = W * Cout
    NB = _images_per_step(N, H)
    steps = N // NB
    out_dtype = out_dtype if out_dtype is not None else x2.dtype

    # Gate the dense row-conv formulation to shapes where the weights are small.
    assert g_flat.size * jnp.dtype(g_flat.dtype).itemsize <= 8 * 1024 * 1024, \
        "dense row-conv weights too large for VMEM; use a W-tiled im2col form"

    kernel = _make_fused_kernel(NB, H, W, C, Cout, conv_dtype,
                                with_residual=residual is not None,
                                with_stats=emit_stats)

    in_specs = [
        pl.BlockSpec((NB, H, WC), lambda n: (n, 0, 0)),      # activations (lane-dense)
        pl.BlockSpec((1, WC), lambda n: (0, 0)),             # BN scale
        pl.BlockSpec((1, WC), lambda n: (0, 0)),             # BN shift
        # TODO(synk): request single-buffering (pipeline_mode=pl.Buffered(1)) for
        #             this constant-index weight block once the weights grow.
        pl.BlockSpec((3 * WC, WCo), lambda n: (0, 0)),       # flattened row-conv weights
    ]
    args = [x2, scale_t, shift_t, g_flat]
    if residual is not None:
        in_specs.append(pl.BlockSpec((NB, H, WCo), lambda n: (n, 0, 0)))
        args.append(residual)

    out_shape = [jax.ShapeDtypeStruct((N, H, WCo), out_dtype)]
    out_specs = [pl.BlockSpec((NB, H, WCo), lambda n: (n, 0, 0))]
    if emit_stats:
        out_shape += [jax.ShapeDtypeStruct((steps, 1, WCo), jnp.float32)] * 2
        out_specs += [pl.BlockSpec((1, 1, WCo), lambda n: (n, 0, 0))] * 2

    return pl.pallas_call(
        kernel,
        out_shape=tuple(out_shape),
        grid=(steps,),
        in_specs=in_specs,
        out_specs=tuple(out_specs),
        compiler_params=pltpu.CompilerParams(
            dimension_semantics=("parallel",),               # shards across TCs on v7x
            vmem_limit_bytes=VMEM_LIMIT),
    )(*args)


def basic_block_v2(x_nchw, params, conv_dtype=jnp.float32):
    """Pre-activation ResNet basic block (stride=1, downsample=None -> identity)."""
    N, C, H, W = x_nchw.shape
    Cout = params["w1"].shape[-1]
    assert C == Cout, "identity residual requires in_channels == out_channels"

    x = jnp.transpose(x_nchw, (0, 2, 3, 1))       # NCHW -> NHWC (boundary only)
    x2 = x.reshape(N, H, W * C)                   # lane-dense row view (free reshape)
    count = N * H * W

    # Intermediate (conv1 output) dtype: bf16 in the bf16 path halves its HBM traffic.
    h_dtype = jnp.bfloat16 if conv_dtype == jnp.bfloat16 else x2.dtype

    # bn1 statistics: one grid-accumulated pass over x, then tiny C-sized finalize.
    s1, q1 = _channel_stats(x2.reshape(N * H, W * C))
    scale1, shift1 = _finalize_bn(s1, q1, params["g1"], params["b1"], count, W)

    g1 = _toeplitz_weights(params["w1"], W).astype(conv_dtype)
    g2 = _toeplitz_weights(params["w2"], W).astype(conv_dtype)

    # bn1-affine + relu + conv1 (fused); also emits bn2 statistics of h1.
    h1, s2, q2 = _fused_bn_relu_conv(x2, scale1, shift1, g1, C=C, Cout=Cout,
                                     conv_dtype=conv_dtype, out_dtype=h_dtype,
                                     emit_stats=True)
    scale2, shift2 = _finalize_bn(s2, q2, params["g2"], params["b2"], count, W)

    # bn2-affine + relu + conv2 + identity residual (fused).
    (out2,) = _fused_bn_relu_conv(h1, scale2, shift2, g2, C=Cout, Cout=Cout,
                                  conv_dtype=conv_dtype, out_dtype=x2.dtype,
                                  residual=x2)

    out = out2.reshape(N, H, W, Cout)
    return jnp.transpose(out, (0, 3, 1, 2))       # NHWC -> NCHW


# --------------------------- pure-JAX reference ----------------------------- #

def _ref_forward(x_nchw, params):
    x = jnp.transpose(x_nchw, (0, 2, 3, 1))

    def bn_relu(x, g, b):
        mean = x.mean(axis=(0, 1, 2), keepdims=True)
        var = ((x - mean) ** 2).mean(axis=(0, 1, 2), keepdims=True)
        return jnp.maximum((x - mean) * lax.rsqrt(var + EPS) * g + b, 0.0)

    def conv(x, w):
        return lax.conv_general_dilated(
            x, w, window_strides=(1, 1), padding="SAME",
            dimension_numbers=("NHWC", "HWIO", "NHWC"))

    out = conv(bn_relu(x, params["g1"], params["b1"]), params["w1"])
    out = conv(bn_relu(out, params["g2"], params["b2"]), params["w2"])
    out = out + x
    return jnp.transpose(out, (0, 3, 1, 2))


# ----------------------------------- main ----------------------------------- #

if __name__ == "__main__":
    key = jax.random.PRNGKey(0)
    kx, kw1, kw2, kg1, kb1, kg2, kb2 = jax.random.split(key, 7)

    # batch=2, channels=8 (in == out -> identity residual), 16x16 spatial (W*C = 128)
    N, C, H, W = 2, 8, 16, 16
    x = jax.random.normal(kx, (N, C, H, W), jnp.float32)

    # conv weights created in PyTorch layout (out, in, kh, kw), converted to HWIO
    w1_oihw = 0.1 * jax.random.normal(kw1, (C, C, 3, 3), jnp.float32)
    w2_oihw = 0.1 * jax.random.normal(kw2, (C, C, 3, 3), jnp.float32)

    params = {
        "g1": 1.0 + 0.1 * jax.random.normal(kg1, (C,), jnp.float32),
        "b1": 0.1 * jax.random.normal(kb1, (C,), jnp.float32),
        "g2": 1.0 + 0.1 * jax.random.normal(kg2, (C,), jnp.float32),
        "b2": 0.1 * jax.random.normal(kb2, (C,), jnp.float32),
        "w1": jnp.transpose(w1_oihw, (2, 3, 1, 0)),  # OIHW -> HWIO
        "w2": jnp.transpose(w2_oihw, (2, 3, 1, 0)),
    }

    ref = jax.block_until_ready(_ref_forward(x, params))

    # f32 path: strict check against the PyTorch-equivalent reference.
    fwd_f32 = jax.jit(functools.partial(basic_block_v2, conv_dtype=jnp.float32))
    out = jax.block_until_ready(fwd_f32(x, params))
    assert out.shape == (N, C, H, W), out.shape
    assert jnp.allclose(out, ref, atol=1e-4, rtol=1e-4), float(jnp.max(jnp.abs(out - ref)))

    # bf16 MXU-operand path (v5e/v6e/v7x): stats/accum stay f32; loose tolerance.
    fwd_bf16 = jax.jit(functools.partial(basic_block_v2, conv_dtype=jnp.bfloat16))
    out_bf16 = jax.block_until_ready(fwd_bf16(x, params))
    assert out_bf16.shape == (N, C, H, W), out_bf16.shape
    assert jnp.allclose(out_bf16, ref, atol=1e-1, rtol=1e-1), \
        float(jnp.max(jnp.abs(out_bf16 - ref)))

    print("KERNEL_OK")
</pallas_src>

<mosaic_0001>
module attributes {stable_mosaic.version = 11 : i64} {
  func.func @_stats_kernel(%arg0: i32, %arg1: memref<32x128xf32, #tpu.memory_space<vmem>>, %arg2: memref<1x128xf32, #tpu.memory_space<vmem>>, %arg3: memref<1x128xf32, #tpu.memory_space<vmem>>) attributes {dimension_semantics = [#tpu.dimension_semantics<arbitrary>], iteration_bounds = array<i64: 1>, scalar_prefetch = 0 : i64, scratch_operands = 0 : i64, tpu.core_type = #tpu.core_type<tc>, window_params = [{transform_indices = @transform_0, window_bounds = array<i64: 32, 128>}, {pipeline_mode = #tpu.pipeline_mode<synchronous>, transform_indices = @transform_1, window_bounds = array<i64: 1, 128>}, {pipeline_mode = #tpu.pipeline_mode<synchronous>, transform_indices = @transform_2, window_bounds = array<i64: 1, 128>}]} {
    %c0_i32 = arith.constant 0 : i32
    %0 = arith.cmpi eq, %arg0, %c0_i32 : i32
    %1 = arith.extui %0 : i1 to i32
    %c0_i32_0 = arith.constant 0 : i32
    %2 = arith.cmpi ne, %1, %c0_i32_0 : i32
    scf.if %2 {
      %cst_11 = arith.constant 0.000000e+00 : f32
      %15 = vector.broadcast %cst_11 : f32 to vector<1x128xf32>
      %c0_12 = arith.constant 0 : index
      %c0_13 = arith.constant 0 : index
      %16 = vector.load %arg2[%c0_12, %c0_13] : memref<1x128xf32, #tpu.memory_space<vmem>>, vector<1x128xf32>
      tpu.vector_store %arg2[%c0_12, %c0_13], %15 {strides = array<i32>} : memref<1x128xf32, #tpu.memory_space<vmem>>, vector<1x128xf32>,
      %cst_14 = arith.constant 0.000000e+00 : f32
      %17 = vector.broadcast %cst_14 : f32 to vector<1x128xf32>
      %c0_15 = arith.constant 0 : index
      %c0_16 = arith.constant 0 : index
      %18 = vector.load %arg3[%c0_15, %c0_16] : memref<1x128xf32, #tpu.memory_space<vmem>>, vector<1x128xf32>
      tpu.vector_store %arg3[%c0_15, %c0_16], %17 {strides = array<i32>} : memref<1x128xf32, #tpu.memory_space<vmem>>, vector<1x128xf32>,
    } else {
    }
    %c0 = arith.constant 0 : index
    %c0_1 = arith.constant 0 : index
    %3 = vector.load %arg1[%c0, %c0_1] : memref<32x128xf32, #tpu.memory_space<vmem>>, vector<32x128xf32>
    %c0_2 = arith.constant 0 : index
    %c0_3 = arith.constant 0 : index
    %4 = vector.load %arg2[%c0_2, %c0_3] : memref<1x128xf32, #tpu.memory_space<vmem>>, vector<1x128xf32>
    %cst = arith.constant dense<0.000000e+00> : vector<128xf32>
    %5 = vector.multi_reduction <add>, %3, %cst [0] : vector<32x128xf32> to vector<128xf32>
    %6 = vector.shape_cast %5 : vector<128xf32> to vector<1x128xf32>
    %7 = arith.addf %4, %6 : vector<1x128xf32>
    %c0_4 = arith.constant 0 : index
    %c0_5 = arith.constant 0 : index
    %8 = vector.load %arg2[%c0_4, %c0_5] : memref<1x128xf32, #tpu.memory_space<vmem>>, vector<1x128xf32>
    tpu.vector_store %arg2[%c0_4, %c0_5], %7 {strides = array<i32>} : memref<1x128xf32, #tpu.memory_space<vmem>>, vector<1x128xf32>,
    %c0_6 = arith.constant 0 : index
    %c0_7 = arith.constant 0 : index
    %9 = vector.load %arg3[%c0_6, %c0_7] : memref<1x128xf32, #tpu.memory_space<vmem>>, vector<1x128xf32>
    %10 = arith.mulf %3, %3 : vector<32x128xf32>
    %cst_8 = arith.constant dense<0.000000e+00> : vector<128xf32>
    %11 = vector.multi_reduction <add>, %10, %cst_8 [0] : vector<32x128xf32> to vector<128xf32>
    %12 = vector.shape_cast %11 : vector<128xf32> to vector<1x128xf32>
    %13 = arith.addf %9, %12 : vector<1x128xf32>
    %c0_9 = arith.constant 0 : index
    %c0_10 = arith.constant 0 : index
    %14 = vector.load %arg3[%c0_9, %c0_10] : memref<1x128xf32, #tpu.memory_space<vmem>>, vector<1x128xf32>
    tpu.vector_store %arg3[%c0_9, %c0_10], %13 {strides = array<i32>} : memref<1x128xf32, #tpu.memory_space<vmem>>, vector<1x128xf32>,
    return
  }
  func.func @transform_0(%arg0: i32) -> (i32, i32) {
    %c0_i32 = arith.constant 0 : i32
    %c0_i32_0 = arith.constant 0 : i32
    return %arg0, %c0_i32 : i32, i32
  }
  func.func @transform_1(%arg0: i32) -> (i32, i32) {
    %c0_i32 = arith.constant 0 : i32
    %c0_i32_0 = arith.constant 0 : i32
    %c0_i32_1 = arith.constant 0 : i32
    return %c0_i32, %c0_i32_0 : i32, i32
  }
  func.func @transform_2(%arg0: i32) -> (i32, i32) {
    %c0_i32 = arith.constant 0 : i32
    %c0_i32_0 = arith.constant 0 : i32
    %c0_i32_1 = arith.constant 0 : i32
    return %c0_i32, %c0_i32_0 : i32, i32
  }
}

module attributes {stable_mosaic.version = 11 : i64} {
  func.func @kernel(%arg0: i32, %arg1: memref<2x16x128xf32, #tpu.memory_space<vmem>>, %arg2: memref<1x128xf32, #tpu.memory_space<vmem>>, %arg3: memref<1x128xf32, #tpu.memory_space<vmem>>, %arg4: memref<384x128xf32, #tpu.memory_space<vmem>>, %arg5: memref<2x16x128xf32, #tpu.memory_space<vmem>>, %arg6: memref<1x1x128xf32, #tpu.memory_space<vmem>>, %arg7: memref<1x1x128xf32, #tpu.memory_space<vmem>>) attributes {dimension_semantics = [#tpu.dimension_semantics<parallel>], iteration_bounds = array<i64: 1>, scalar_prefetch = 0 : i64, scratch_operands = 0 : i64, tpu.core_type = #tpu.core_type<tc>, window_params = [{transform_indices = @transform_0, window_bounds = array<i64: 2, 16, 128>}, {pipeline_mode = #tpu.pipeline_mode<synchronous>, transform_indices = @transform_1, window_bounds = array<i64: 1, 128>}, {pipeline_mode = #tpu.pipeline_mode<synchronous>, transform_indices = @transform_2, window_bounds = array<i64: 1, 128>}, {pipeline_mode = #tpu.pipeline_mode<synchronous>, transform_indices = @transform_3, window_bounds = array<i64: 384, 128>}, {transform_indices = @transform_4, window_bounds = array<i64: 2, 16, 128>}, {transform_indices = @transform_5, window_bounds = array<i64: 1, 1, 128>}, {transform_indices = @transform_6, window_bounds = array<i64: 1, 1, 128>}]} {
    %c0 = arith.constant 0 : index
    %c0_0 = arith.constant 0 : index
    %c0_1 = arith.constant 0 : index
    %0 = vector.load %arg1[%c0, %c0_0, %c0_1] : memref<2x16x128xf32, #tpu.memory_space<vmem>>, vector<2x16x128xf32>
    %1 = vector.shape_cast %0 : vector<2x16x128xf32> to vector<32x128xf32>
    %c0_2 = arith.constant 0 : index
    %c0_3 = arith.constant 0 : index
    %2 = vector.load %arg2[%c0_2, %c0_3] : memref<1x128xf32, #tpu.memory_space<vmem>>, vector<1x128xf32>
    %3 = vector.broadcast %2 : vector<1x128xf32> to vector<32x128xf32>
    %4 = arith.mulf %1, %3 : vector<32x128xf32>
    %c0_4 = arith.constant 0 : index
    %c0_5 = arith.constant 0 : index
    %5 = vector.load %arg3[%c0_4, %c0_5] : memref<1x128xf32, #tpu.memory_space<vmem>>, vector<1x128xf32>
    %6 = vector.broadcast %5 : vector<1x128xf32> to vector<32x128xf32>
    %7 = arith.addf %4, %6 : vector<32x128xf32>
    %cst = arith.constant 0.000000e+00 : f32
    %8 = vector.broadcast %cst : f32 to vector<32x128xf32>
    %9 = arith.maximumf %7, %8 : vector<32x128xf32>
    %10 = tpu.iota {dimensions = array<i32: 0>} : vector<32x128xi32>
    %c16_i32 = arith.constant 16 : i32
    %c0_i32 = arith.constant 0 : i32
    %11 = arith.cmpi eq, %c16_i32, %c0_i32 : i32
    %c1_i32 = arith.constant 1 : i32
    %12 = arith.select %11, %c1_i32, %c16_i32 : i32
    %13 = vector.broadcast %12 : i32 to vector<32x128xi32>
    %14 = arith.remsi %10, %13 : vector<32x128xi32>
    %c0_i32_6 = arith.constant 0 : i32
    %15 = vector.broadcast %c0_i32_6 : i32 to vector<32x128xi32>
    %16 = arith.cmpi ne, %14, %15 : vector<32x128xi32>
    %c0_i32_7 = arith.constant 0 : i32
    %17 = vector.broadcast %c0_i32_7 : i32 to vector<32x128xi32>
    %18 = arith.cmpi slt, %14, %17 : vector<32x128xi32>
    %c0_i32_8 = arith.constant 0 : i32
    %19 = arith.cmpi slt, %12, %c0_i32_8 : i32
    %20 = vector.broadcast %19 : i1 to vector<32x128xi1>
    %21 = vector.broadcast %20 : vector<32x128xi1> to vector<32x128xi1>
    %22 = arith.xori %18, %21 : vector<32x128xi1>
    %23 = arith.andi %22, %16 : vector<32x128xi1>
    %24 = vector.broadcast %12 : i32 to vector<32x128xi32>
    %25 = arith.addi %14, %24 : vector<32x128xi32>
    %26 = arith.select %23, %25, %14 : vector<32x128xi1>, vector<32x128xi32>
    %c0_i32_9 = arith.constant 0 : i32
    %27 = vector.broadcast %c0_i32_9 : i32 to vector<32x128xi32>
    %28 = arith.cmpi eq, %26, %27 : vector<32x128xi32>
    %c1_i32_10 = arith.constant 1 : i32
    %29 = tpu.dynamic_rotate %9 by %c1_i32_10 dim 0 : vector<32x128xf32>, i32 -> vector<32x128xf32>
    %cst_11 = arith.constant 0.000000e+00 : f32
    %30 = vector.broadcast %cst_11 : f32 to vector<32x128xf32>
    %31 = arith.select %28, %30, %29 : vector<32x128xi1>, vector<32x128xf32>
    %c15_i32 = arith.constant 15 : i32
    %32 = vector.broadcast %c15_i32 : i32 to vector<32x128xi32>
    %33 = arith.cmpi eq, %26, %32 : vector<32x128xi32>
    %c31_i32 = arith.constant 31 : i32
    %34 = tpu.dynamic_rotate %9 by %c31_i32 dim 0 : vector<32x128xf32>, i32 -> vector<32x128xf32>
    %cst_12 = arith.constant 0.000000e+00 : f32
    %35 = vector.broadcast %cst_12 : f32 to vector<32x128xf32>
    %36 = arith.select %33, %35, %34 : vector<32x128xi1>, vector<32x128xf32>
    %37 = tpu.concatenate %31, %9, %36 in 1 : vector<32x128xf32>, vector<32x128xf32>, vector<32x128xf32> -> vector<32x384xf32>
    %c0_13 = arith.constant 0 : index
    %c0_14 = arith.constant 0 : index
    %38 = vector.load %arg4[%c0_13, %c0_14] : memref<384x128xf32, #tpu.memory_space<vmem>>, vector<384x128xf32>
    %cst_15 = arith.constant dense<0.000000e+00> : vector<32x128xf32>
    %39 = tpu.matmul %37, %38, %cst_15 {dimension_numbers = #tpu.dot_dimension_numbers<[1], [0], [0], [1], [0, 0, 1, 1], [], []>} : vector<32x384xf32>, vector<384x128xf32>, vector<32x128xf32> -> vector<32x128xf32>
    %cst_16 = arith.constant dense<0.000000e+00> : vector<128xf32>
    %40 = vector.multi_reduction <add>, %39, %cst_16 [0] : vector<32x128xf32> to vector<128xf32>
    %41 = vector.shape_cast %40 : vector<128xf32> to vector<1x128xf32>
    %42 = vector.shape_cast %41 : vector<1x128xf32> to vector<1x1x128xf32>
    %c0_17 = arith.constant 0 : index
    %c0_18 = arith.constant 0 : index
    %c0_19 = arith.constant 0 : index
    %43 = vector.load %arg6[%c0_17, %c0_18, %c0_19] : memref<1x1x128xf32, #tpu.memory_space<vmem>>, vector<1x1x128xf32>
    tpu.vector_store %arg6[%c0_17, %c0_18, %c0_19], %42 {strides = array<i32>} : memref<1x1x128xf32, #tpu.memory_space<vmem>>, vector<1x1x128xf32>,
    %44 = arith.mulf %39, %39 : vector<32x128xf32>
    %cst_20 = arith.constant dense<0.000000e+00> : vector<128xf32>
    %45 = vector.multi_reduction <add>, %44, %cst_20 [0] : vector<32x128xf32> to vector<128xf32>
    %46 = vector.shape_cast %45 : vector<128xf32> to vector<1x128xf32>
    %47 = vector.shape_cast %46 : vector<1x128xf32> to vector<1x1x128xf32>
    %c0_21 = arith.constant 0 : index
    %c0_22 = arith.constant 0 : index
    %c0_23 = arith.constant 0 : index
    %48 = vector.load %arg7[%c0_21, %c0_22, %c0_23] : memref<1x1x128xf32, #tpu.memory_space<vmem>>, vector<1x1x128xf32>
    tpu.vector_store %arg7[%c0_21, %c0_22, %c0_23], %47 {strides = array<i32>} : memref<1x1x128xf32, #tpu.memory_space<vmem>>, vector<1x1x128xf32>,
    %49 = vector.shape_cast %39 : vector<32x128xf32> to vector<2x16x128xf32>
    %c0_24 = arith.constant 0 : index
    %c0_25 = arith.constant 0 : index
    %c0_26 = arith.constant 0 : index
    %50 = vector.load %arg5[%c0_24, %c0_25, %c0_26] : memref<2x16x128xf32, #tpu.memory_space<vmem>>, vector<2x16x128xf32>
    tpu.vector_store %arg5[%c0_24, %c0_25, %c0_26], %49 {strides = array<i32>} : memref<2x16x128xf32, #tpu.memory_space<vmem>>, vector<2x16x128xf32>,
    return
  }
  func.func @transform_0(%arg0: i32) -> (i32, i32, i32) {
    %c0_i32 = arith.constant 0 : i32
    %c0_i32_0 = arith.constant 0 : i32
    %c0_i32_1 = arith.constant 0 : i32
    return %arg0, %c0_i32, %c0_i32_0 : i32, i32, i32
  }
  func.func @transform_1(%arg0: i32) -> (i32, i32) {
    %c0_i32 = arith.constant 0 : i32
    %c0_i32_0 = arith.constant 0 : i32
    %c0_i32_1 = arith.constant 0 : i32
    return %c0_i32, %c0_i32_0 : i32, i32
  }
  func.func @transform_2(%arg0: i32) -> (i32, i32) {
    %c0_i32 = arith.constant 0 : i32
    %c0_i32_0 = arith.constant 0 : i32
    %c0_i32_1 = arith.constant 0 : i32
    return %c0_i32, %c0_i32_0 : i32, i32
  }
  func.func @transform_3(%arg0: i32) -> (i32, i32) {
    %c0_i32 = arith.constant 0 : i32
    %c0_i32_0 = arith.constant 0 : i32
    %c0_i32_1 = arith.constant 0 : i32
    return %c0_i32, %c0_i32_0 : i32, i32
  }
  func.func @transform_4(%arg0: i32) -> (i32, i32, i32) {
    %c0_i32 = arith.constant 0 : i32
    %c0_i32_0 = arith.constant 0 : i32
    %c0_i32_1 = arith.constant 0 : i32
    return %arg0, %c0_i32, %c0_i32_0 : i32, i32, i32
  }
  func.func @transform_5(%arg0: i32) -> (i32, i32, i32) {
    %c0_i32 = arith.constant 0 : i32
    %c0_i32_0 = arith.constant 0 : i32
    %c0_i32_1 = arith.constant 0 : i32
    return %arg0, %c0_i32, %c0_i32_0 : i32, i32, i32
  }
  func.func @transform_6(%arg0: i32) -> (i32, i32, i32) {
    %c0_i32 = arith.constant 0 : i32
    %c0_i32_0 = arith.constant 0 : i32
    %c0_i32_1 = arith.constant 0 : i32
    return %arg0, %c0_i32, %c0_i32_0 : i32, i32, i32
  }
}

module attributes {stable_mosaic.version = 11 : i64} {
  func.func @kernel(%arg0: i32, %arg1: memref<2x16x128xf32, #tpu.memory_space<vmem>>, %arg2: memref<1x128xf32, #tpu.memory_space<vmem>>, %arg3: memref<1x128xf32, #tpu.memory_space<vmem>>, %arg4: memref<384x128xf32, #tpu.memory_space<vmem>>, %arg5: memref<2x16x128xf32, #tpu.memory_space<vmem>>, %arg6: memref<2x16x128xf32, #tpu.memory_space<vmem>>) attributes {dimension_semantics = [#tpu.dimension_semantics<parallel>], iteration_bounds = array<i64: 1>, scalar_prefetch = 0 : i64, scratch_operands = 0 : i64, tpu.core_type = #tpu.core_type<tc>, window_params = [{transform_indices = @transform_0, window_bounds = array<i64: 2, 16, 128>}, {pipeline_mode = #tpu.pipeline_mode<synchronous>, transform_indices = @transform_1, window_bounds = array<i64: 1, 128>}, {pipeline_mode = #tpu.pipeline_mode<synchronous>, transform_indices = @transform_2, window_bounds = array<i64: 1, 128>}, {pipeline_mode = #tpu.pipeline_mode<synchronous>, transform_indices = @transform_3, window_bounds = array<i64: 384, 128>}, {transform_indices = @transform_4, window_bounds = array<i64: 2, 16, 128>}, {transform_indices = @transform_5, window_bounds = array<i64: 2, 16, 128>}]} {
    %c0 = arith.constant 0 : index
    %c0_0 = arith.constant 0 : index
    %c0_1 = arith.constant 0 : index
    %0 = vector.load %arg1[%c0, %c0_0, %c0_1] : memref<2x16x128xf32, #tpu.memory_space<vmem>>, vector<2x16x128xf32>
    %1 = vector.shape_cast %0 : vector<2x16x128xf32> to vector<32x128xf32>
    %c0_2 = arith.constant 0 : index
    %c0_3 = arith.constant 0 : index
    %2 = vector.load %arg2[%c0_2, %c0_3] : memref<1x128xf32, #tpu.memory_space<vmem>>, vector<1x128xf32>
    %3 = vector.broadcast %2 : vector<1x128xf32> to vector<32x128xf32>
    %4 = arith.mulf %1, %3 : vector<32x128xf32>
    %c0_4 = arith.constant 0 : index
    %c0_5 = arith.constant 0 : index
    %5 = vector.load %arg3[%c0_4, %c0_5] : memref<1x128xf32, #tpu.memory_space<vmem>>, vector<1x128xf32>
    %6 = vector.broadcast %5 : vector<1x128xf32> to vector<32x128xf32>
    %7 = arith.addf %4, %6 : vector<32x128xf32>
    %cst = arith.constant 0.000000e+00 : f32
    %8 = vector.broadcast %cst : f32 to vector<32x128xf32>
    %9 = arith.maximumf %7, %8 : vector<32x128xf32>
    %10 = tpu.iota {dimensions = array<i32: 0>} : vector<32x128xi32>
    %c16_i32 = arith.constant 16 : i32
    %c0_i32 = arith.constant 0 : i32
    %11 = arith.cmpi eq, %c16_i32, %c0_i32 : i32
    %c1_i32 = arith.constant 1 : i32
    %12 = arith.select %11, %c1_i32, %c16_i32 : i32
    %13 = vector.broadcast %12 : i32 to vector<32x128xi32>
    %14 = arith.remsi %10, %13 : vector<32x128xi32>
    %c0_i32_6 = arith.constant 0 : i32
    %15 = vector.broadcast %c0_i32_6 : i32 to vector<32x128xi32>
    %16 = arith.cmpi ne, %14, %15 : vector<32x128xi32>
    %c0_i32_7 = arith.constant 0 : i32
    %17 = vector.broadcast %c0_i32_7 : i32 to vector<32x128xi32>
    %18 = arith.cmpi slt, %14, %17 : vector<32x128xi32>
    %c0_i32_8 = arith.constant 0 : i32
    %19 = arith.cmpi slt, %12, %c0_i32_8 : i32
    %20 = vector.broadcast %19 : i1 to vector<32x128xi1>
    %21 = vector.broadcast %20 : vector<32x128xi1> to vector<32x128xi1>
    %22 = arith.xori %18, %21 : vector<32x128xi1>
    %23 = arith.andi %22, %16 : vector<32x128xi1>
    %24 = vector.broadcast %12 : i32 to vector<32x128xi32>
    %25 = arith.addi %14, %24 : vector<32x128xi32>
    %26 = arith.select %23, %25, %14 : vector<32x128xi1>, vector<32x128xi32>
    %c0_i32_9 = arith.constant 0 : i32
    %27 = vector.broadcast %c0_i32_9 : i32 to vector<32x128xi32>
    %28 = arith.cmpi eq, %26, %27 : vector<32x128xi32>
    %c1_i32_10 = arith.constant 1 : i32
    %29 = tpu.dynamic_rotate %9 by %c1_i32_10 dim 0 : vector<32x128xf32>, i32 -> vector<32x128xf32>
    %cst_11 = arith.constant 0.000000e+00 : f32
    %30 = vector.broadcast %cst_11 : f32 to vector<32x128xf32>
    %31 = arith.select %28, %30, %29 : vector<32x128xi1>, vector<32x128xf32>
    %c15_i32 = arith.constant 15 : i32
    %32 = vector.broadcast %c15_i32 : i32 to vector<32x128xi32>
    %33 = arith.cmpi eq, %26, %32 : vector<32x128xi32>
    %c31_i32 = arith.constant 31 : i32
    %34 = tpu.dynamic_rotate %9 by %c31_i32 dim 0 : vector<32x128xf32>, i32 -> vector<32x128xf32>
    %cst_12 = arith.constant 0.000000e+00 : f32
    %35 = vector.broadcast %cst_12 : f32 to vector<32x128xf32>
    %36 = arith.select %33, %35, %34 : vector<32x128xi1>, vector<32x128xf32>
    %37 = tpu.concatenate %31, %9, %36 in 1 : vector<32x128xf32>, vector<32x128xf32>, vector<32x128xf32> -> vector<32x384xf32>
    %c0_13 = arith.constant 0 : index
    %c0_14 = arith.constant 0 : index
    %38 = vector.load %arg4[%c0_13, %c0_14] : memref<384x128xf32, #tpu.memory_space<vmem>>, vector<384x128xf32>
    %cst_15 = arith.constant dense<0.000000e+00> : vector<32x128xf32>
    %39 = tpu.matmul %37, %38, %cst_15 {dimension_numbers = #tpu.dot_dimension_numbers<[1], [0], [0], [1], [0, 0, 1, 1], [], []>} : vector<32x384xf32>, vector<384x128xf32>, vector<32x128xf32> -> vector<32x128xf32>
    %c0_16 = arith.constant 0 : index
    %c0_17 = arith.constant 0 : index
    %c0_18 = arith.constant 0 : index
    %40 = vector.load %arg5[%c0_16, %c0_17, %c0_18] : memref<2x16x128xf32, #tpu.memory_space<vmem>>, vector<2x16x128xf32>
    %41 = vector.shape_cast %40 : vector<2x16x128xf32> to vector<32x128xf32>
    %42 = arith.addf %39, %41 : vector<32x128xf32>
    %43 = vector.shape_cast %42 : vector<32x128xf32> to vector<2x16x128xf32>
    %c0_19 = arith.constant 0 : index
    %c0_20 = arith.constant 0 : index
    %c0_21 = arith.constant 0 : index
    %44 = vector.load %arg6[%c0_19, %c0_20, %c0_21] : memref<2x16x128xf32, #tpu.memory_space<vmem>>, vector<2x16x128xf32>
    tpu.vector_store %arg6[%c0_19, %c0_20, %c0_21], %43 {strides = array<i32>} : memref<2x16x128xf32, #tpu.memory_space<vmem>>, vector<2x16x128xf32>,
    return
  }
  func.func @transform_0(%arg0: i32) -> (i32, i32, i32) {
    %c0_i32 = arith.constant 0 : i32
    %c0_i32_0 = arith.constant 0 : i32
    %c0_i32_1 = arith.constant 0 : i32
    return %arg0, %c0_i32, %c0_i32_0 : i32, i32, i32
  }
  func.func @transform_1(%arg0: i32) -> (i32, i32) {
    %c0_i32 = arith.constant 0 : i32
    %c0_i32_0 = arith.constant 0 : i32
    %c0_i32_1 = arith.constant 0 : i32
    return %c0_i32, %c0_i32_0 : i32, i32
  }
  func.func @transform_2(%arg0: i32) -> (i32, i32) {
    %c0_i32 = arith.constant 0 : i32
    %c0_i32_0 = arith.constant 0 : i32
    %c0_i32_1 = arith.constant 0 : i32
    return %c0_i32, %c0_i32_0 : i32, i32
  }
  func.func @transform_3(%arg0: i32) -> (i32, i32) {
    %c0_i32 = arith.constant 0 : i32
    %c0_i32_0 = arith.constant 0 : i32
    %c0_i32_1 = arith.constant 0 : i32
    return %c0_i32, %c0_i32_0 : i32, i32
  }
  func.func @transform_4(%arg0: i32) -> (i32, i32, i32) {
    %c0_i32 = arith.constant 0 : i32
    %c0_i32_0 = arith.constant 0 : i32
    %c0_i32_1 = arith.constant 0 : i32
    return %arg0, %c0_i32, %c0_i32_0 : i32, i32, i32
  }
  func.func @transform_5(%arg0: i32) -> (i32, i32, i32) {
    %c0_i32 = arith.constant 0 : i32
    %c0_i32_0 = arith.constant 0 : i32
    %c0_i32_1 = arith.constant 0 : i32
    return %arg0, %c0_i32, %c0_i32_0 : i32, i32, i32
  }
}

</mosaic_0001>

<bundles_post_ra>
// kernel: tile.23
= control target key start
LH: loop header
LB: loop body
LE: loop exit
PB: predicated region body
PF: predicated region fallthrough
CT: control target
= control target key end

     0   :  { %s28_s0 = inlined_call_operand.vmem [shape: f32[8], index: 0, kind: input, shape index: {}]   ;;  %s29_s1 = inlined_call_operand.vmem [shape: f32[16,8], index: 1, kind: output, shape index: {}]  }
   0x1   :  { %v4_v0 = vld [vmem:[%s28_s0] ss:$0 sm:$0xff] }
   0x2   :  { %5 = vst [vmem:[%s29_s1] sm:$0xff] %v4_v0  ;;  %8 = vst [vmem:[%s29_s1 + $0x8] sm:$0xff] %v4_v0 }

// kernel: tile.24
= control target key start
LH: loop header
LB: loop body
LE: loop exit
PB: predicated region body
PF: predicated region fallthrough
CT: control target
= control target key end

     0   :  { %s131_s10 = smov 120   ;;  %s132_s11 = smov 104   ;;  %vm3_vm0 = vcmask 64512   ;;  %vm9_vm1 = vcmask 1048512   ;;  %vm15_vm2 = vcmask 982912   ;;  %vm21_vm3 = vcmask 917312   ;;  %s207_s0 = inlined_call_operand.vmem [shape: f32[16,8], index: 0, kind: input, shape index: {}]   ;;  %s208_s1 = inlined_call_operand.vmem [shape: f32[1,128], index: 1, kind: output, shape index: {}]  }
   0x1   :  { %v101_v0 = vld [vmem:[%s207_s0 + $0xf] sm:$0x1]   ;;  %v103_v1 = vld [vmem:[%s207_s0 + $0xd] sm:$0x1]   ;;  %v102_v2 = vld [vmem:[%s207_s0 + $0xe] sm:$0x1]  }
   0x2   :  { %7 = vrot.lane.b32.xlu0 %v101_v0, %s131_s10  ;;  %19 = vrot.lane.b32.xlu1 %v103_v1, %s132_s11  ;;  %v104_v3 = vld [vmem:[%s207_s0 + $0xc] sm:$0x1]   ;;  %s133_s16 = smov 112   ;;  %s134_s17 = smov 96   ;;  %v105_v4 = vld [vmem:[%s207_s0 + $0xb] sm:$0x1]  }
   0x3   :  { %v106_v5 = vld [vmem:[%s207_s0 + $0xa] sm:$0x1]   ;;  %v2_v6 = vld [vmem:[%s207_s0] sm:$0x1]   ;;  %s135_s24 = smov 88   ;;  %s136_s25 = smov 80  }
   0x4   :  { %4 = vst.msk [vmem:[#allocation0] sm:$0x1] %vm3_vm0, %v2_v6   ;;  %v107_v7 = vld [vmem:[%s207_s0 + $0x9] sm:$0x1]   ;;  %v108_v8 = vld [vmem:[%s207_s0 + $0x8] sm:$0x1]  }
   0x5   :  { %s137_s30 = smov 72   ;;  %s138_s2 = smov 64   ;;  %v109_v9 = vld [vmem:[%s207_s0 + $0x7] sm:$0x1]   ;;  %v110_v10 = vld [vmem:[%s207_s0 + $0x6] sm:$0x1]  }
   0x6   :  { %13 = vrot.lane.b32.xlu0 %v102_v2, %s133_s16  ;;  %25 = vrot.lane.b32.xlu1 %v104_v3, %s134_s17  ;;  %s139_s7 = smov 56   ;;  %s140_s8 = smov 48   ;;  %v111_v11 = vld [vmem:[%s207_s0 + $0x5] sm:$0x1]   ;;  %v112_v12 = vld [vmem:[%s207_s0 + $0x4] sm:$0x1]  }
   0x7   :  { %s141_s13 = smov 40   ;;  %s142_s14 = smov 32   ;;  %v113_v13 = vld [vmem:[%s207_s0 + $0x3] sm:$0x1]   ;;  %v114_v14 = vld [vmem:[%s207_s0 + $0x2] sm:$0x1]  }
   0x8   :  { %s143_s19 = smov 24   ;;  %s144_s20 = smov 16   ;;  %v115_v15 = vld [vmem:[%s207_s0 + $0x1] sm:$0x1]   ;;  %vm27_vm4 = vcmask 851712   ;;  %vm33_vm5 = vcmask 786112  }
   0x9   :  { %s145_s0 = smov 8   ;;  %vm39_vm6 = vcmask 720512   ;;  %vm45_vm7 = vcmask 654912   ;;  %vm51_vm8 = vcmask 589312   ;;  %vm57_vm9 = vcmask 523712  }
   0xa   :  { %31 = vrot.lane.b32.xlu0 %v105_v4, %s135_s24  ;;  %37 = vrot.lane.b32.xlu1 %v106_v5, %s136_s25  ;;  %vm63_vm10 = vcmask 458112   ;;  %vm69_vm11 = vcmask 392512   ;;  %vm75_vm12 = vcmask 326912   ;;  %vm81_vm13 = vcmask 261312  }
   0xb   :  { %vm87_vm14 = vcmask 195712   ;;  %vm93_vm15 = vcmask 130112  }
   0xe   :  { %43 = vrot.lane.b32.xlu0 %v107_v7, %s137_s30  ;;  %49 = vrot.lane.b32.xlu1 %v108_v8, %s138_s2 }
  0x12   :  { %55 = vrot.lane.b32.xlu0 %v109_v9, %s139_s7  ;;  %61 = vrot.lane.b32.xlu1 %v110_v10, %s140_s8 }
  0x16   :  { %67 = vrot.lane.b32.xlu0 %v111_v11, %s141_s13  ;;  %73 = vrot.lane.b32.xlu1 %v112_v12, %s142_s14 }
  0x1a   :  { %79 = vrot.lane.b32.xlu0 %v113_v13, %s143_s19  ;;  %85 = vrot.lane.b32.xlu1 %v114_v14, %s144_s20 }
  0x1e   :  { %91 = vrot.lane.b32.xlu0 %v115_v15, %s145_s0 }
  0x74   :  { %v8_v16 = vpop.permute.xlu0 %7   ;;  %v20_v17 = vpop.permute.xlu1 %19  }
  0x75   :  { %10 = vst.msk [vmem:[#allocation0] sm:$0x1] %vm9_vm1, %v8_v16  }
  0x78   :  { %v14_v18 = vpop.permute.xlu0 %13   ;;  %v26_v19 = vpop.permute.xlu1 %25  }
  0x79   :  { %16 = vst.msk [vmem:[#allocation0] sm:$0x1] %vm15_vm2, %v14_v18  }
  0x7a   :  { %22 = vst.msk [vmem:[#allocation0] sm:$0x1] %vm21_vm3, %v20_v17  }
  0x7b   :  { %28 = vst.msk [vmem:[#allocation0] sm:$0x1] %vm27_vm4, %v26_v19  }
  0x7c   :  { %v32_v20 = vpop.permute.xlu0 %31   ;;  %v38_v21 = vpop.permute.xlu1 %37  }
  0x7d   :  { %34 = vst.msk [vmem:[#allocation0] sm:$0x1] %vm33_vm5, %v32_v20  }
  0x7e   :  { %40 = vst.msk [vmem:[#allocation0] sm:$0x1] %vm39_vm6, %v38_v21  }
  0x80   :  { %v44_v22 = vpop.permute.xlu0 %43   ;;  %v50_v23 = vpop.permute.xlu1 %49  }
  0x81   :  { %46 = vst.msk [vmem:[#allocation0] sm:$0x1] %vm45_vm7, %v44_v22  }
  0x82   :  { %52 = vst.msk [vmem:[#allocation0] sm:$0x1] %vm51_vm8, %v50_v23  }
  0x84   :  { %v56_v24 = vpop.permute.xlu0 %55   ;;  %v62_v25 = vpop.permute.xlu1 %61  }
  0x85   :  { %58 = vst.msk [vmem:[#allocation0] sm:$0x1] %vm57_vm9, %v56_v24  }
  0x86   :  { %64 = vst.msk [vmem:[#allocation0] sm:$0x1] %vm63_vm10, %v62_v25  }
  0x88   :  { %v68_v26 = vpop.permute.xlu0 %67   ;;  %v74_v27 = vpop.permute.xlu1 %73  }
  0x89   :  { %70 = vst.msk [vmem:[#allocation0] sm:$0x1] %vm69_vm11, %v68_v26  }
  0x8a   :  { %76 = vst.msk [vmem:[#allocation0] sm:$0x1] %vm75_vm12, %v74_v27  }
  0x8c   :  { %v80_v28 = vpop.permute.xlu0 %79   ;;  %v86_v29 = vpop.permute.xlu1 %85  }
  0x8d   :  { %82 = vst.msk [vmem:[#allocation0] sm:$0x1] %vm81_vm13, %v80_v28  }
  0x8e   :  { %88 = vst.msk [vmem:[#allocation0] sm:$0x1] %vm87_vm14, %v86_v29  }
  0x90   :  { %v92_v30 = vpop.permute.xlu0 %91  }
  0x91   :  { %94 = vst.msk [vmem:[#allocation0] sm:$0x1] %vm93_vm15, %v92_v30  }
  0x98   :  { %v98_v31 = vld [vmem:[#allocation0] sm:$0x1] }
  0x99   :  { %100 = vst [vmem:[%s208_s1] sm:$0x1] %v98_v31 }

// kernel: basic_block_v2.3
= control target key start
LH: loop header
LB: loop body
LE: loop exit
PB: predicated region body
PF: predicated region fallthrough
CT: control target
= control target key end

     0   :  { %v57_v0 = vmov 0.0   ;;  %s103_s1 = inlined_call_operand.vmem [shape: f32[1,128], index: 1, kind: output, shape index: {0}]   ;;  %s104_s2 = inlined_call_operand.vmem [shape: f32[1,128], index: 2, kind: output, shape index: {1}]   ;;  %s105_s0 = inlined_call_operand.vmem [shape: f32[32,128], index: 0, kind: input, shape index: {}]  }
   0x1   :  { %14 = vst [vmem:[%s103_s1] sm:$0x1] %v57_v0  ;;  %15 = vst [vmem:[%s104_s2] sm:$0x1] %v57_v0  ;;  %v16_v1 = vld [vmem:[%s105_s0] sm:$0xff]  ;;  %v17_v2 = vld [vmem:[%s105_s0 + $0x8] sm:$0xff] }
   0x2   :  { %v18_v3 = vld [vmem:[%s105_s0 + $0x10] sm:$0xff]  ;;  %v19_v4 = vld [vmem:[%s105_s0 + $0x18] sm:$0xff]  ;;  %v21_v5 = vadd.f32 %v17_v2, %v16_v1  ;;  %v33_v6 = vmul.f32 %v16_v1, %v16_v1  ;;  %v34_v7 = vmul.f32 %v17_v2, %v17_v2 }
   0x3   :  { %v35_v8 = vmul.f32 %v18_v3, %v18_v3  ;;  %v36_v10 = vmul.f32 %v19_v4, %v19_v4 }
   0x4   :  { %v22_v9 = vadd.f32 %v21_v5, %v18_v3  ;;  %v37_v11 = vadd.f32 %v34_v7, %v33_v6 }
   0x6   :  { %v23_v12 = vadd.f32 %v22_v9, %v19_v4  ;;  %v38_v13 = vadd.f32 %v37_v11, %v35_v8 }
   0x8   :  { %v24_v14 = vrot.slane %v23_v12, 4  ;;  %v39_v15 = vadd.f32 %v38_v13, %v36_v10  ;;  %v20_v24 = vld [vmem:[%s103_s1] sm:$0x1] }
   0x9   :  { %v32_v27 = vld [vmem:[%s104_s2] sm:$0x1] }
   0xa   :  { %v25_v16 = vadd.f32 %v24_v14, %v23_v12  ;;  %v40_v17 = vrot.slane %v39_v15, 4 }
   0xc   :  { %v26_v18 = vrot.slane %v25_v16, 2  ;;  %v41_v19 = vadd.f32 %v40_v17, %v39_v15 }
   0xe   :  { %v27_v20 = vadd.f32 %v26_v18, %v25_v16  ;;  %v42_v21 = vrot.slane %v41_v19, 2 }
  0x10   :  { %v28_v22 = vrot.slane %v27_v20, 1  ;;  %v43_v23 = vadd.f32 %v42_v21, %v41_v19 }
  0x12   :  { %v29_v25 = vadd.f32 %v28_v22, %v27_v20  ;;  %v44_v26 = vrot.slane %v43_v23, 1 }
  0x14   :  { %v30_v28 = vadd.f32 %v29_v25, %v20_v24  ;;  %v45_v29 = vadd.f32 %v44_v26, %v43_v23 }
  0x16   :  { %31 = vst [vmem:[%s103_s1] sm:$0x1] %v30_v28  ;;  %v46_v30 = vadd.f32 %v45_v29, %v32_v27 }
  0x18   :  { %47 = vst [vmem:[%s104_s2] sm:$0x1] %v46_v30 }

// kernel: basic_block_v2.4
= control target key start
LH: loop header
LB: loop body
LE: loop exit
PB: predicated region body
PF: predicated region fallthrough
CT: control target
= control target key end

     0   :  { %v50_v58 = vlaneseq  ;;  %s814_s3 = inlined_call_operand.vmem [shape: f32[384,128], index: 3, kind: input, shape index: {}]   ;;  %s815_s0 = inlined_call_operand.vmem [shape: f32[2,16,128], index: 0, kind: input, shape index: {}]   ;;  %s816_s1 = inlined_call_operand.vmem [shape: f32[1,128], index: 1, kind: input, shape index: {}]   ;;  %s817_s2 = inlined_call_operand.vmem [shape: f32[1,128], index: 2, kind: input, shape index: {}]   ;;  %s818_s4 = inlined_call_operand.vmem [shape: f32[2,16,128], index: 4, kind: output, shape index: {0}]   ;;  %s819_s5 = inlined_call_operand.vmem [shape: f32[1,1,128], index: 5, kind: output, shape index: {1}]   ;;  %s820_s6 = inlined_call_operand.vmem [shape: f32[1,1,128], index: 6, kind: output, shape index: {2}]  }
   0x1   :  { %v153_v0 = vld [vmem:[%s814_s3 + $0x80] sm:$0xff]  ;;  %v154_v1 = vld [vmem:[%s814_s3 + $0x88] sm:$0xff]  ;;  %v155_v9 = vld [vmem:[%s814_s3 + $0x90] sm:$0xff] }
   0x2   :  { %v137_v2 = vld [vmem:[%s814_s3] sm:$0xff]  ;;  %v511_v3 = vpack.c.bf16 %v154_v1, %v153_v0  ;;  %v138_v4 = vld [vmem:[%s814_s3 + $0x8] sm:$0xff]  ;;  %v156_v10 = vld [vmem:[%s814_s3 + $0x98] sm:$0xff] }
   0x3   :  { %v169_v5 = vld [vmem:[%s814_s3 + $0x100] sm:$0xff]  ;;  %v170_v6 = vld [vmem:[%s814_s3 + $0x108] sm:$0xff]  ;;  %v513_v7 = vpack.c.bf16 %v138_v4, %v137_v2  ;;  %v139_v11 = vld [vmem:[%s814_s3 + $0x10] sm:$0xff]  ;;  %v515_v12 = vpack.c.bf16 %v156_v10, %v155_v9 }
   0x4   :  { %v543_v8 = vpack.c.bf16 %v170_v6, %v169_v5  ;;  %512 = vmatprep.subr.bf16.mxu0 %v511_v3  ;;  %v140_v13 = vld [vmem:[%s814_s3 + $0x18] sm:$0xff]  ;;  %v171_v14 = vld [vmem:[%s814_s3 + $0x110] sm:$0xff]  ;;  %v157_v18 = vld [vmem:[%s814_s3 + $0xa0] sm:$0xff] }
   0x5   :  { %v172_v15 = vld [vmem:[%s814_s3 + $0x118] sm:$0xff]  ;;  %514 = vmatpush3.bf16.msra.mxu0 %v513_v7  ;;  %v517_v16 = vpack.c.bf16 %v140_v13, %v139_v11  ;;  %v158_v19 = vld [vmem:[%s814_s3 + $0xa8] sm:$0xff]  ;;  %v141_v20 = vld [vmem:[%s814_s3 + $0x20] sm:$0xff] }
   0x6   :  { %544 = vmatprep.subr.bf16.mxu1 %v543_v8  ;;  %v547_v17 = vpack.c.bf16 %v172_v15, %v171_v14  ;;  %516 = vmatprep.subr.bf16.mxu0 %v515_v12  ;;  %v519_v21 = vpack.c.bf16 %v158_v19, %v157_v18  ;;  %v142_v22 = vld [vmem:[%s814_s3 + $0x28] sm:$0xff]  ;;  %v173_v23 = vld [vmem:[%s814_s3 + $0x120] sm:$0xff]  ;;  %v159_v26 = vld [vmem:[%s814_s3 + $0xb0] sm:$0xff]  ;;  %v754_v12 = vshrl.u32 %v50_v58, 7 }
   0x7   :  { %546 = vmatpush3.bf16.msra.mxu1 %v543_v8  ;;  %v174_v24 = vld [vmem:[%s814_s3 + $0x128] sm:$0xff]  ;;  %v160_v27 = vld [vmem:[%s814_s3 + $0xb8] sm:$0xff]  ;;  %v175_v28 = vld [vmem:[%s814_s3 + $0x130] sm:$0xff]  ;;  %v521_v30 = vpack.c.bf16 %v142_v22, %v141_v20 }
   0x8   :  { %548 = vmatprep.subr.bf16.mxu1 %v547_v17  ;;  %v551_v25 = vpack.c.bf16 %v174_v24, %v173_v23  ;;  %v176_v29 = vld [vmem:[%s814_s3 + $0x138] sm:$0xff]  ;;  %v523_v31 = vpack.c.bf16 %v160_v27, %v159_v26  ;;  %v143_v32 = vld [vmem:[%s814_s3 + $0x30] sm:$0xff]  ;;  %v161_v35 = vld [vmem:[%s814_s3 + $0xc0] sm:$0xff]  ;;  %vm128_vm0 = vcmp.lt.s32.totalorder %v754_v12, 7  ;;  %vm111_vm1 = vcmp.lt.s32.totalorder %v754_v12, 1 }
   0x9   :  { %518 = vmatpush3.bf16.msra.mxu0 %v517_v16  ;;  %v144_v33 = vld [vmem:[%s814_s3 + $0x38] sm:$0xff]  ;;  %v555_v34 = vpack.c.bf16 %v176_v29, %v175_v28  ;;  %v162_v36 = vld [vmem:[%s814_s3 + $0xc8] sm:$0xff]  ;;  %v177_v37 = vld [vmem:[%s814_s3 + $0x140] sm:$0xff]  ;;  %v52_v28 = vadd.s32 8, %v754_v12 }
   0xa   :  { %520 = vmatprep.subr.bf16.mxu0 %v519_v21  ;;  %v178_v38 = vld [vmem:[%s814_s3 + $0x148] sm:$0xff]  ;;  %v525_v39 = vpack.c.bf16 %v144_v33, %v143_v32  ;;  %v527_v40 = vpack.c.bf16 %v162_v36, %v161_v35  ;;  %v145_v41 = vld [vmem:[%s814_s3 + $0x40] sm:$0xff]  ;;  %v163_v43 = vld [vmem:[%s814_s3 + $0xd0] sm:$0xff]  ;;  %v59_v32 = vand.u32 15, %v754_v12 }
   0xb   :  { %550 = vmatpush3.bf16.msra.mxu1 %v547_v17  ;;  %v146_v42 = vld [vmem:[%s814_s3 + $0x48] sm:$0xff]  ;;  %v559_v44 = vpack.c.bf16 %v178_v38, %v177_v37  ;;  %v164_v45 = vld [vmem:[%s814_s3 + $0xd8] sm:$0xff]  ;;  %v179_v46 = vld [vmem:[%s814_s3 + $0x150] sm:$0xff]  ;;  %v66_v35 = vand.u32 15, %v52_v28  ;;  %v54_v37 = vadd.s32 24, %v754_v12 }
   0xc   :  { %552 = vmatprep.subr.bf16.mxu1 %v551_v25  ;;  %v180_v47 = vld [vmem:[%s814_s3 + $0x158] sm:$0xff]  ;;  %v147_v48 = vld [vmem:[%s814_s3 + $0x50] sm:$0xff]  ;;  %v529_v50 = vpack.c.bf16 %v146_v42, %v145_v41  ;;  %v20_v51 = vld [vmem:[%s815_s0] sm:$0xff]  ;;  %v531_v54 = vpack.c.bf16 %v164_v45, %v163_v43  ;;  %vm405_vm2 = vcmp.ne.s32.totalorder %v59_v32, 0  ;;  %v53_v41 = vadd.s32 16, %v754_v12 }
   0xd   :  { %522 = vmatpush3.bf16.msra.mxu0 %v521_v30  ;;  %v148_v49 = vld [vmem:[%s814_s3 + $0x58] sm:$0xff]  ;;  %v22_v52 = vld [vmem:[%s815_s0 + $0x10] sm:$0xff]  ;;  %v563_v55 = vpack.c.bf16 %v180_v47, %v179_v46  ;;  %v395_v56 = vld [vmem:[%s816_s1] ss:$0 sm:$0xff]  ;;  %vm407_vm3 = vcmp.ne.s32.totalorder %v66_v35, 15  ;;  %v80_v43 = vand.u32 15, %v54_v37 }
   0xe   :  { %524 = vmatprep.subr.bf16.mxu0 %v523_v31  ;;  %v23_v53 = vld [vmem:[%s815_s0 + $0x18] sm:$0xff]  ;;  %v396_v57 = vld [vmem:[%s817_s2] ss:$0 sm:$0xff]  ;;  %v21_v59 = vld [vmem:[%s815_s0 + $0x8] sm:$0xff]  ;;  %v31_v62 = vmul.f32 %v395_v56, %v20_v51  ;;  %v33_v63 = vmul.f32 %v395_v56, %v22_v52  ;;  %v533_v4 = vpack.c.bf16 %v148_v49, %v147_v48  ;;  %v73_v46 = vand.u32 15, %v53_v41 }
   0xf   :  { %554 = vmatpush3.bf16.msra.mxu1 %v551_v25  ;;  %v165_v60 = vld [vmem:[%s814_s3 + $0xe0] sm:$0xff]  ;;  %v166_v61 = vld [vmem:[%s814_s3 + $0xe8] sm:$0xff]  ;;  %v34_v0 = vmul.f32 %v395_v56, %v23_v53  ;;  %v32_v1 = vmul.f32 %v395_v56, %v21_v59  ;;  %v167_v14 = vld [vmem:[%s814_s3 + $0xf0] sm:$0xff]  ;;  %vm408_vm4 = vcmp.ne.s32.totalorder %v80_v43, 15 }
  0x10   :  { %556 = vmatprep.subr.bf16.mxu1 %v555_v34  ;;  %v181_v2 = vld [vmem:[%s814_s3 + $0x160] sm:$0xff]  ;;  %v182_v3 = vld [vmem:[%s814_s3 + $0x168] sm:$0xff]  ;;  %v42_v5 = vadd.f32 %v396_v57, %v31_v62  ;;  %v535_v8 = vpack.c.bf16 %v166_v61, %v165_v60  ;;  %v44_v11 = vadd.f32 %v396_v57, %v33_v63  ;;  %v168_v15 = vld [vmem:[%s814_s3 + $0xf8] sm:$0xff]  ;;  %vm406_vm5 = vcmp.ne.s32.totalorder %v73_v46, 0 }
  0x11   :  { %526 = vmatpush3.bf16.msra.mxu0 %v525_v39  ;;  %v45_v6 = vadd.f32 %v396_v57, %v34_v0  ;;  %v43_v7 = vadd.f32 %v396_v57, %v32_v1  ;;  %v149_v9 = vld [vmem:[%s814_s3 + $0x60] sm:$0xff]  ;;  %v150_v10 = vld [vmem:[%s814_s3 + $0x68] sm:$0xff]  ;;  %v567_v13 = vpack.c.bf16 %v182_v3, %v181_v2  ;;  %v183_v18 = vld [vmem:[%s814_s3 + $0x170] sm:$0xff]  ;;  %v539_v24 = vpack.c.bf16 %v168_v15, %v167_v14 }
  0x12   :  { %528 = vmatprep.subr.bf16.mxu0 %v527_v40  ;;  %v46_v16 = vmax.f32 %v42_v5, 0.0  ;;  %v184_v19 = vld [vmem:[%s814_s3 + $0x178] sm:$0xff]  ;;  %v537_v20 = vpack.c.bf16 %v150_v10, %v149_v9  ;;  %v151_v25 = vld [vmem:[%s814_s3 + $0x70] sm:$0xff]  ;;  %v48_v27 = vmax.f32 %v44_v11, 0.0 }
  0x13   :  { %558 = vmatpush3.bf16.msra.mxu1 %v555_v34  ;;  %v47_v17 = vmax.f32 %v43_v7, 0.0  ;;  %v49_v21 = vmax.f32 %v45_v6, 0.0  ;;  %v152_v26 = vld [vmem:[%s814_s3 + $0x78] sm:$0xff]  ;;  %v571_v29 = vpack.c.bf16 %v184_v19, %v183_v18 }
  0x14   :  { %560 = vmatprep.subr.bf16.mxu1 %v559_v44  ;;  %249 = vmatprep.mubr.f32.mxu0 %v46_v16  ;;  %v124_v22 = vrot.slane %v46_v16, 1  ;;  %v541_v31 = vpack.c.bf16 %v152_v26, %v151_v25  ;;  %v107_v33 = vrot.slane %v46_v16, 7  ;;  %v126_v36 = vrot.slane %v48_v27, 1 }
  0x15   :  { %530 = vmatpush3.bf16.msra.mxu0 %v529_v50  ;;  %v125_v23 = vrot.slane %v47_v17, 1  ;;  %v110_v34 = vrot.slane %v49_v21, 7  ;;  %v127_v38 = vrot.slane %v49_v21, 1  ;;  %v108_v40 = vrot.slane %v47_v17, 7 }
  0x16   :  { %532 = vmatprep.subr.bf16.mxu0 %v531_v54  ;;  %v109_v47 = vrot.slane %v48_v27, 7 }
  0x17   :  { %562 = vmatpush3.bf16.msra.mxu1 %v559_v44  ;;  %v131_v30 = vsel %vm128_vm0, %v124_v22, %v125_v23  ;;  %v115_v39 = vsel %vm111_vm1, %v110_v34, %v107_v33  ;;  %v130_v42 = vsel %vm128_vm0, %v125_v23, %v126_v36  ;;  %v129_v44 = vsel %vm128_vm0, %v126_v36, %v127_v38 }
  0x18   :  { %564 = vmatprep.subr.bf16.mxu1 %v563_v55  ;;  %505 = vmatprep.mubr.f32.mxu1 %v131_v30  ;;  %v114_v45 = vsel %vm111_vm1, %v107_v33, %v108_v40  ;;  %v132_v48 = vsel %vm128_vm0, %v127_v38, %v124_v22  ;;  %v113_v49 = vsel %vm111_vm1, %v108_v40, %v109_v47 }
  0x19   :  { %534 = vmatpush3.bf16.msra.mxu0 %v533_v4  ;;  %v112_v50 = vsel %vm111_vm1, %v109_v47, %v110_v34 }
  0x1a   :  { %536 = vmatprep.subr.bf16.mxu0 %v535_v8 }
  0x1b   :  { %566 = vmatpush3.bf16.msra.mxu1 %v563_v55 }
  0x1c   :  { %568 = vmatprep.subr.bf16.mxu1 %v567_v13 }
  0x1d   :  { %538 = vmatpush3.bf16.msra.mxu0 %v537_v20 }
  0x1e   :  { %540 = vmatprep.subr.bf16.mxu0 %v539_v24 }
  0x1f   :  { %570 = vmatpush3.bf16.msra.mxu1 %v567_v13 }
  0x20   :  { %572 = vmatprep.subr.bf16.mxu1 %v571_v29 }
  0x21   :  { %542 = vmatpush3.bf16.msra.mxu0 %v541_v31 }
  0x23   :  { %574 = vmatpush3.bf16.msra.mxu1 %v571_v29 }
  0x24   :  { %398 = vmatmul.mubr.msk.f32.vlgmr.msra.gmra.mrb[0].mxu0 %vm405_vm2, %v115_v39 }
  0x25   :  { %254 = vmatprep.mubr.f32.mxu0 %v47_v17 }
  0x26   :  { %506 = vmatmul.mubr.msk.f32.vlgmr.msra.gmra.mrb[0].mxu1 %vm407_vm3, %v130_v42 }
  0x27   :  { %508 = vmatprep.mubr.f32.mxu1 %v129_v44 }
  0x28   :  { %255 = vmatmul.mubr.f32.gmra.mrb[2].mxu0 %v114_v45 }
  0x29   :  { %259 = vmatprep.mubr.f32.mxu0 %v48_v27 }
  0x2a   :  { %509 = vmatmul.mubr.msk.f32.gmra.mrb[2].mxu1 %vm408_vm4, %v132_v48 }
  0x2c   :  { %400 = vmatmul.mubr.msk.f32.gmra.mrb[4].mxu0 %vm406_vm5, %v113_v49 }
  0x2d   :  { %264 = vmatprep.mubr.f32.mxu0 %v49_v21 }
  0x30   :  { %265 = vmatmul.mubr.f32.gmra.mrb[6].mxu0 %v112_v50 }
  0xf7   :  { %v441_v51 = vpop.f32.mrb[0].mxu0 }
  0xf8   :  { %v442_v52 = vpop.f32.mrb[1].mxu0 }
  0xf9   :  { %v507_v53 = vpop.f32.mrb[0].mxu1  ;;  %v443_v54 = vadd.f32 %v442_v52, %v441_v51 }
  0xfa   :  { %v336_v55 = vpop.f32.mrb[1].mxu1 }
  0xfb   :  { %v337_v56 = vadd.f32 %v443_v54, %v336_v55  ;;  %v444_v57 = vpop.f32.mrb[2].mxu0 }
  0xfc   :  { %v445_v58 = vpop.f32.mrb[3].mxu0 }
  0xfd   :  { %v510_v59 = vpop.f32.mrb[2].mxu1  ;;  %379 = vst [vmem:[%s818_s4] sm:$0xff] %v337_v56  ;;  %v446_v60 = vadd.f32 %v445_v58, %v444_v57  ;;  %v365_v1 = vmul.f32 %v337_v56, %v337_v56 }
  0xfe   :  { %v346_v61 = vpop.f32.mrb[3].mxu1 }
  0xff   :  { %v342_v62 = vadd.f32 %v507_v53, %v446_v60  ;;  %v447_v63 = vpop.f32.mrb[4].mxu0 }
 0x100   :  { %v448_v0 = vpop.f32.mrb[5].mxu0 }
 0x101   :  { %v366_v2 = vmul.f32 %v342_v62, %v342_v62  ;;  %380 = vst [vmem:[%s818_s4 + $0x8] sm:$0xff] %v342_v62  ;;  %v449_v3 = vadd.f32 %v448_v0, %v447_v63  ;;  %v355_v4 = vadd.f32 %v342_v62, %v337_v56 }
 0x103   :  { %v347_v5 = vadd.f32 %v449_v3, %v346_v61  ;;  %v369_v6 = vadd.f32 %v366_v2, %v365_v1  ;;  %v450_v7 = vpop.f32.mrb[6].mxu0 }
 0x104   :  { %v451_v8 = vpop.f32.mrb[7].mxu0 }
 0x105   :  { %v356_v9 = vadd.f32 %v355_v4, %v347_v5  ;;  %v367_v10 = vmul.f32 %v347_v5, %v347_v5  ;;  %381 = vst [vmem:[%s818_s4 + $0x10] sm:$0xff] %v347_v5  ;;  %v452_v11 = vadd.f32 %v451_v8, %v450_v7 }
 0x107   :  { %v370_v12 = vadd.f32 %v369_v6, %v367_v10  ;;  %v352_v13 = vadd.f32 %v510_v59, %v452_v11 }
 0x109   :  { %v357_v14 = vadd.f32 %v356_v9, %v352_v13  ;;  %v368_v15 = vmul.f32 %v352_v13, %v352_v13  ;;  %382 = vst [vmem:[%s818_s4 + $0x18] sm:$0xff] %v352_v13 }
 0x10b   :  { %v358_v16 = vrot.slane %v357_v14, 4  ;;  %v371_v17 = vadd.f32 %v370_v12, %v368_v15 }
 0x10d   :  { %v359_v18 = vadd.f32 %v358_v16, %v357_v14  ;;  %v372_v19 = vrot.slane %v371_v17, 4 }
 0x10f   :  { %v360_v20 = vrot.slane %v359_v18, 2  ;;  %v373_v21 = vadd.f32 %v372_v19, %v371_v17 }
 0x111   :  { %v361_v22 = vadd.f32 %v360_v20, %v359_v18  ;;  %v374_v23 = vrot.slane %v373_v21, 2 }
 0x113   :  { %v362_v24 = vrot.slane %v361_v22, 1  ;;  %v375_v25 = vadd.f32 %v374_v23, %v373_v21 }
 0x115   :  { %v363_v26 = vadd.f32 %v362_v24, %v361_v22  ;;  %v376_v27 = vrot.slane %v375_v25, 1 }
 0x117   :  { %364 = vst [vmem:[%s819_s5] sm:$0x1] %v363_v26  ;;  %v377_v28 = vadd.f32 %v376_v27, %v375_v25 }
 0x119   :  { %378 = vst [vmem:[%s820_s6] sm:$0x1] %v377_v28 }

// kernel: basic_block_v2.5
= control target key start
LH: loop header
LB: loop body
LE: loop exit
PB: predicated region body
PF: predicated region fallthrough
CT: control target
= control target key end

     0   :  { %v50_v59 = vlaneseq  ;;  %s787_s3 = inlined_call_operand.vmem [shape: f32[384,128], index: 3, kind: input, shape index: {}]   ;;  %s788_s0 = inlined_call_operand.vmem [shape: f32[2,16,128], index: 0, kind: input, shape index: {}]   ;;  %s789_s1 = inlined_call_operand.vmem [shape: f32[1,128], index: 1, kind: input, shape index: {}]   ;;  %s790_s2 = inlined_call_operand.vmem [shape: f32[1,128], index: 2, kind: input, shape index: {}]   ;;  %s791_s4 = inlined_call_operand.vmem [shape: f32[2,16,128], index: 4, kind: input, shape index: {}]   ;;  %s792_s5 = inlined_call_operand.vmem [shape: f32[2,16,128], index: 5, kind: output, shape index: {}]  }
   0x1   :  { %v153_v0 = vld [vmem:[%s787_s3 + $0x80] sm:$0xff]  ;;  %v154_v1 = vld [vmem:[%s787_s3 + $0x88] sm:$0xff]  ;;  %v155_v5 = vld [vmem:[%s787_s3 + $0x90] sm:$0xff] }
   0x2   :  { %v137_v2 = vld [vmem:[%s787_s3] sm:$0xff]  ;;  %v483_v3 = vpack.c.bf16 %v154_v1, %v153_v0  ;;  %v138_v4 = vld [vmem:[%s787_s3 + $0x8] sm:$0xff]  ;;  %v156_v6 = vld [vmem:[%s787_s3 + $0x98] sm:$0xff] }
   0x3   :  { %v485_v7 = vpack.c.bf16 %v138_v4, %v137_v2  ;;  %v487_v8 = vpack.c.bf16 %v156_v6, %v155_v5  ;;  %v169_v9 = vld [vmem:[%s787_s3 + $0x100] sm:$0xff]  ;;  %v170_v10 = vld [vmem:[%s787_s3 + $0x108] sm:$0xff]  ;;  %v139_v11 = vld [vmem:[%s787_s3 + $0x10] sm:$0xff] }
   0x4   :  { %484 = vmatprep.subr.bf16.mxu0 %v483_v3  ;;  %v515_v12 = vpack.c.bf16 %v170_v10, %v169_v9  ;;  %v140_v13 = vld [vmem:[%s787_s3 + $0x18] sm:$0xff]  ;;  %v157_v14 = vld [vmem:[%s787_s3 + $0xa0] sm:$0xff]  ;;  %v158_v15 = vld [vmem:[%s787_s3 + $0xa8] sm:$0xff] }
   0x5   :  { %486 = vmatpush3.bf16.msra.mxu0 %v485_v7  ;;  %v489_v16 = vpack.c.bf16 %v140_v13, %v139_v11  ;;  %v171_v17 = vld [vmem:[%s787_s3 + $0x110] sm:$0xff]  ;;  %v172_v18 = vld [vmem:[%s787_s3 + $0x118] sm:$0xff]  ;;  %v491_v19 = vpack.c.bf16 %v158_v15, %v157_v14  ;;  %v141_v21 = vld [vmem:[%s787_s3 + $0x20] sm:$0xff] }
   0x6   :  { %488 = vmatprep.subr.bf16.mxu0 %v487_v8  ;;  %516 = vmatprep.subr.bf16.mxu1 %v515_v12  ;;  %v519_v20 = vpack.c.bf16 %v172_v18, %v171_v17  ;;  %v142_v22 = vld [vmem:[%s787_s3 + $0x28] sm:$0xff]  ;;  %v159_v23 = vld [vmem:[%s787_s3 + $0xb0] sm:$0xff]  ;;  %v160_v24 = vld [vmem:[%s787_s3 + $0xb8] sm:$0xff] }
   0x7   :  { %518 = vmatpush3.bf16.msra.mxu1 %v515_v12  ;;  %v173_v25 = vld [vmem:[%s787_s3 + $0x120] sm:$0xff]  ;;  %v174_v26 = vld [vmem:[%s787_s3 + $0x128] sm:$0xff]  ;;  %v493_v28 = vpack.c.bf16 %v142_v22, %v141_v21  ;;  %v175_v29 = vld [vmem:[%s787_s3 + $0x130] sm:$0xff]  ;;  %v495_v31 = vpack.c.bf16 %v160_v24, %v159_v23  ;;  %v721_v12 = vshrl.u32 %v50_v59, 7 }
   0x8   :  { %520 = vmatprep.subr.bf16.mxu1 %v519_v20  ;;  %v523_v27 = vpack.c.bf16 %v174_v26, %v173_v25  ;;  %v176_v30 = vld [vmem:[%s787_s3 + $0x138] sm:$0xff]  ;;  %v143_v32 = vld [vmem:[%s787_s3 + $0x30] sm:$0xff]  ;;  %v161_v34 = vld [vmem:[%s787_s3 + $0xc0] sm:$0xff] }
   0x9   :  { %490 = vmatpush3.bf16.msra.mxu0 %v489_v16  ;;  %v144_v33 = vld [vmem:[%s787_s3 + $0x38] sm:$0xff]  ;;  %v162_v35 = vld [vmem:[%s787_s3 + $0xc8] sm:$0xff]  ;;  %v527_v36 = vpack.c.bf16 %v176_v30, %v175_v29  ;;  %v177_v38 = vld [vmem:[%s787_s3 + $0x140] sm:$0xff]  ;;  %vm128_vm0 = vcmp.lt.s32.totalorder %v721_v12, 7  ;;  %v52_v29 = vadd.s32 8, %v721_v12  ;;  %vm111_vm1 = vcmp.lt.s32.totalorder %v721_v12, 1 }
   0xa   :  { %492 = vmatprep.subr.bf16.mxu0 %v491_v19  ;;  %v497_v37 = vpack.c.bf16 %v144_v33, %v143_v32  ;;  %v178_v39 = vld [vmem:[%s787_s3 + $0x148] sm:$0xff]  ;;  %v499_v40 = vpack.c.bf16 %v162_v35, %v161_v34  ;;  %v145_v41 = vld [vmem:[%s787_s3 + $0x40] sm:$0xff]  ;;  %v163_v43 = vld [vmem:[%s787_s3 + $0xd0] sm:$0xff]  ;;  %v59_v32 = vand.u32 15, %v721_v12 }
   0xb   :  { %522 = vmatpush3.bf16.msra.mxu1 %v519_v20  ;;  %v146_v42 = vld [vmem:[%s787_s3 + $0x48] sm:$0xff]  ;;  %v164_v44 = vld [vmem:[%s787_s3 + $0xd8] sm:$0xff]  ;;  %v179_v45 = vld [vmem:[%s787_s3 + $0x150] sm:$0xff]  ;;  %v531_v46 = vpack.c.bf16 %v178_v39, %v177_v38  ;;  %v66_v35 = vand.u32 15, %v52_v29 }
   0xc   :  { %524 = vmatprep.subr.bf16.mxu1 %v523_v27  ;;  %v180_v47 = vld [vmem:[%s787_s3 + $0x158] sm:$0xff]  ;;  %v20_v48 = vld [vmem:[%s788_s0] sm:$0xff]  ;;  %v22_v49 = vld [vmem:[%s788_s0 + $0x10] sm:$0xff]  ;;  %v501_v50 = vpack.c.bf16 %v146_v42, %v145_v41  ;;  %v503_v54 = vpack.c.bf16 %v164_v44, %v163_v43  ;;  %vm377_vm2 = vcmp.ne.s32.totalorder %v59_v32, 0  ;;  %v53_v41 = vadd.s32 16, %v721_v12 }
   0xd   :  { %494 = vmatpush3.bf16.msra.mxu0 %v493_v28  ;;  %v23_v51 = vld [vmem:[%s788_s0 + $0x18] sm:$0xff]  ;;  %v367_v52 = vld [vmem:[%s789_s1] ss:$0 sm:$0xff]  ;;  %v147_v55 = vld [vmem:[%s787_s3 + $0x50] sm:$0xff]  ;;  %v535_v1 = vpack.c.bf16 %v180_v47, %v179_v45  ;;  %vm379_vm3 = vcmp.ne.s32.totalorder %v66_v35, 15 }
   0xe   :  { %496 = vmatprep.subr.bf16.mxu0 %v495_v31  ;;  %v368_v53 = vld [vmem:[%s790_s2] ss:$0 sm:$0xff]  ;;  %v148_v56 = vld [vmem:[%s787_s3 + $0x58] sm:$0xff]  ;;  %v31_v57 = vmul.f32 %v367_v52, %v20_v48  ;;  %v34_v58 = vmul.f32 %v367_v52, %v23_v51  ;;  %v21_v60 = vld [vmem:[%s788_s0 + $0x8] sm:$0xff]  ;;  %v33_v63 = vmul.f32 %v367_v52, %v22_v49 }
   0xf   :  { %526 = vmatpush3.bf16.msra.mxu1 %v523_v27  ;;  %v165_v61 = vld [vmem:[%s787_s3 + $0xe0] sm:$0xff]  ;;  %v166_v62 = vld [vmem:[%s787_s3 + $0xe8] sm:$0xff]  ;;  %v32_v0 = vmul.f32 %v367_v52, %v21_v60  ;;  %v505_v3 = vpack.c.bf16 %v148_v56, %v147_v55  ;;  %v167_v13 = vld [vmem:[%s787_s3 + $0xf0] sm:$0xff] }
  0x10   :  { %528 = vmatprep.subr.bf16.mxu1 %v527_v36  ;;  %v42_v2 = vadd.f32 %v368_v53, %v31_v57  ;;  %v181_v4 = vld [vmem:[%s787_s3 + $0x160] sm:$0xff]  ;;  %v182_v5 = vld [vmem:[%s787_s3 + $0x168] sm:$0xff]  ;;  %v45_v6 = vadd.f32 %v368_v53, %v34_v58  ;;  %v507_v8 = vpack.c.bf16 %v166_v62, %v165_v61  ;;  %v168_v14 = vld [vmem:[%s787_s3 + $0xf8] sm:$0xff]  ;;  %v44_v15 = vadd.f32 %v368_v53, %v33_v63 }
  0x11   :  { %498 = vmatpush3.bf16.msra.mxu0 %v497_v37  ;;  %v43_v7 = vadd.f32 %v368_v53, %v32_v0  ;;  %v149_v9 = vld [vmem:[%s787_s3 + $0x60] sm:$0xff]  ;;  %v150_v10 = vld [vmem:[%s787_s3 + $0x68] sm:$0xff]  ;;  %v539_v17 = vpack.c.bf16 %v182_v5, %v181_v4  ;;  %v183_v21 = vld [vmem:[%s787_s3 + $0x170] sm:$0xff]  ;;  %v511_v24 = vpack.c.bf16 %v168_v14, %v167_v13  ;;  %v54_v37 = vadd.s32 24, %v721_v12 }
  0x12   :  { %500 = vmatprep.subr.bf16.mxu0 %v499_v40  ;;  %v46_v11 = vmax.f32 %v42_v2, 0.0  ;;  %v509_v19 = vpack.c.bf16 %v150_v10, %v149_v9  ;;  %v49_v20 = vmax.f32 %v45_v6, 0.0  ;;  %v184_v22 = vld [vmem:[%s787_s3 + $0x178] sm:$0xff]  ;;  %v151_v25 = vld [vmem:[%s787_s3 + $0x70] sm:$0xff]  ;;  %v48_v28 = vmax.f32 %v44_v15, 0.0  ;;  %v185_v53 = vld [vmem:[%s791_s4] sm:$0xff] }
  0x13   :  { %530 = vmatpush3.bf16.msra.mxu1 %v527_v36  ;;  %v47_v16 = vmax.f32 %v43_v7, 0.0  ;;  %v152_v26 = vld [vmem:[%s787_s3 + $0x78] sm:$0xff]  ;;  %v543_v30 = vpack.c.bf16 %v184_v22, %v183_v21  ;;  %v80_v43 = vand.u32 15, %v54_v37  ;;  %v186_v59 = vld [vmem:[%s791_s4 + $0x8] sm:$0xff]  ;;  %v187_v4 = vld [vmem:[%s791_s4 + $0x10] sm:$0xff] }
  0x14   :  { %532 = vmatprep.subr.bf16.mxu1 %v531_v46  ;;  %253 = vmatprep.mubr.f32.mxu0 %v46_v11  ;;  %v124_v18 = vrot.slane %v46_v11, 1  ;;  %v513_v31 = vpack.c.bf16 %v152_v26, %v151_v25  ;;  %v107_v33 = vrot.slane %v46_v11, 7  ;;  %v110_v34 = vrot.slane %v49_v20, 7  ;;  %v188_v9 = vld [vmem:[%s791_s4 + $0x18] sm:$0xff] }
  0x15   :  { %502 = vmatpush3.bf16.msra.mxu0 %v501_v50  ;;  %v125_v23 = vrot.slane %v47_v16, 1  ;;  %v126_v36 = vrot.slane %v48_v28, 1  ;;  %v127_v38 = vrot.slane %v49_v20, 1  ;;  %v108_v40 = vrot.slane %v47_v16, 7 }
  0x16   :  { %504 = vmatprep.subr.bf16.mxu0 %v503_v54  ;;  %v115_v39 = vsel %vm111_vm1, %v110_v34, %v107_v33  ;;  %v109_v47 = vrot.slane %v48_v28, 7  ;;  %vm380_vm4 = vcmp.ne.s32.totalorder %v80_v43, 15 }
  0x17   :  { %534 = vmatpush3.bf16.msra.mxu1 %v531_v46  ;;  %v131_v27 = vsel %vm128_vm0, %v124_v18, %v125_v23  ;;  %v130_v42 = vsel %vm128_vm0, %v125_v23, %v126_v36  ;;  %v129_v44 = vsel %vm128_vm0, %v126_v36, %v127_v38  ;;  %v114_v45 = vsel %vm111_vm1, %v107_v33, %v108_v40 }
  0x18   :  { %536 = vmatprep.subr.bf16.mxu1 %v535_v1  ;;  %477 = vmatprep.mubr.f32.mxu1 %v131_v27  ;;  %v73_v46 = vand.u32 15, %v53_v41  ;;  %v132_v48 = vsel %vm128_vm0, %v127_v38, %v124_v18  ;;  %v113_v49 = vsel %vm111_vm1, %v108_v40, %v109_v47  ;;  %v112_v50 = vsel %vm111_vm1, %v109_v47, %v110_v34 }
  0x19   :  { %506 = vmatpush3.bf16.msra.mxu0 %v505_v3 }
  0x1a   :  { %508 = vmatprep.subr.bf16.mxu0 %v507_v8  ;;  %vm378_vm5 = vcmp.ne.s32.totalorder %v73_v46, 0 }
  0x1b   :  { %538 = vmatpush3.bf16.msra.mxu1 %v535_v1 }
  0x1c   :  { %540 = vmatprep.subr.bf16.mxu1 %v539_v17 }
  0x1d   :  { %510 = vmatpush3.bf16.msra.mxu0 %v509_v19 }
  0x1e   :  { %512 = vmatprep.subr.bf16.mxu0 %v511_v24 }
  0x1f   :  { %542 = vmatpush3.bf16.msra.mxu1 %v539_v17 }
  0x20   :  { %544 = vmatprep.subr.bf16.mxu1 %v543_v30 }
  0x21   :  { %514 = vmatpush3.bf16.msra.mxu0 %v513_v31 }
  0x23   :  { %546 = vmatpush3.bf16.msra.mxu1 %v543_v30 }
  0x24   :  { %370 = vmatmul.mubr.msk.f32.vlgmr.msra.gmra.mrb[0].mxu0 %vm377_vm2, %v115_v39 }
  0x25   :  { %258 = vmatprep.mubr.f32.mxu0 %v47_v16 }
  0x26   :  { %478 = vmatmul.mubr.msk.f32.vlgmr.msra.gmra.mrb[0].mxu1 %vm379_vm3, %v130_v42 }
  0x27   :  { %480 = vmatprep.mubr.f32.mxu1 %v129_v44 }
  0x28   :  { %259 = vmatmul.mubr.f32.gmra.mrb[2].mxu0 %v114_v45 }
  0x29   :  { %263 = vmatprep.mubr.f32.mxu0 %v48_v28 }
  0x2a   :  { %481 = vmatmul.mubr.msk.f32.gmra.mrb[2].mxu1 %vm380_vm4, %v132_v48 }
  0x2c   :  { %372 = vmatmul.mubr.msk.f32.gmra.mrb[4].mxu0 %vm378_vm5, %v113_v49 }
  0x2d   :  { %268 = vmatprep.mubr.f32.mxu0 %v49_v20 }
  0x30   :  { %269 = vmatmul.mubr.f32.gmra.mrb[6].mxu0 %v112_v50 }
  0xf7   :  { %v413_v51 = vpop.f32.mrb[0].mxu0 }
  0xf8   :  { %v414_v52 = vpop.f32.mrb[1].mxu0 }
  0xf9   :  { %v415_v54 = vadd.f32 %v414_v52, %v413_v51  ;;  %v479_v55 = vpop.f32.mrb[0].mxu1 }
  0xfa   :  { %v340_v56 = vpop.f32.mrb[1].mxu1 }
  0xfb   :  { %v416_v57 = vpop.f32.mrb[2].mxu0  ;;  %v256_v58 = vadd.f32 %v415_v54, %v185_v53 }
  0xfc   :  { %v417_v60 = vpop.f32.mrb[3].mxu0 }
  0xfd   :  { %v418_v61 = vadd.f32 %v417_v60, %v416_v57  ;;  %v341_v62 = vadd.f32 %v340_v56, %v256_v58  ;;  %v482_v63 = vpop.f32.mrb[2].mxu1 }
  0xfe   :  { %v350_v0 = vpop.f32.mrb[3].mxu1 }
  0xff   :  { %v261_v1 = vadd.f32 %v418_v61, %v186_v59  ;;  %359 = vst [vmem:[%s792_s5] sm:$0xff] %v341_v62  ;;  %v419_v2 = vpop.f32.mrb[4].mxu0 }
 0x100   :  { %v420_v3 = vpop.f32.mrb[5].mxu0 }
 0x101   :  { %v346_v5 = vadd.f32 %v479_v55, %v261_v1  ;;  %v421_v6 = vadd.f32 %v420_v3, %v419_v2 }
 0x103   :  { %360 = vst [vmem:[%s792_s5 + $0x8] sm:$0xff] %v346_v5  ;;  %v422_v7 = vpop.f32.mrb[6].mxu0  ;;  %v266_v8 = vadd.f32 %v421_v6, %v187_v4 }
 0x104   :  { %v423_v10 = vpop.f32.mrb[7].mxu0 }
 0x105   :  { %v424_v11 = vadd.f32 %v423_v10, %v422_v7  ;;  %v351_v12 = vadd.f32 %v350_v0, %v266_v8 }
 0x107   :  { %v271_v13 = vadd.f32 %v424_v11, %v188_v9  ;;  %361 = vst [vmem:[%s792_s5 + $0x10] sm:$0xff] %v351_v12 }
 0x109   :  { %v356_v14 = vadd.f32 %v482_v63, %v271_v13 }
 0x10b   :  { %362 = vst [vmem:[%s792_s5 + $0x18] sm:$0xff] %v356_v14 }

</bundles_post_ra>
